<compile_context>
chip_gen: v5e
topology: v5e:2x2
jax: 0.10.0
libtpu: 0.0.40
codegen_flags: <defaults>
</compile_context>

<pallas_src>
import functools
import math

import jax
import jax.numpy as jnp
from jax.experimental import pallas as pl
from jax.experimental.pallas import tpu as pltpu


def _proba_output_kernel(x_ref, w_ref, b_ref, o_ref):
    # x_ref: (TMp, G*F) VMEM (f32 or bf16), w_ref: (G*F, G*Q) f32 VMEM,
    # b_ref: (1, G*Q) f32 VMEM, o_ref: (TMp, G*Q) f32 VMEM.
    x = x_ref[...].astype(jnp.float32)
    o_ref[...] = (
        jnp.dot(x, w_ref[...], preferred_element_type=jnp.float32) + b_ref[...]
    )


def _pick_group(F):
    """Rows packed per lane-dense row: G*F a multiple of 128, G <= 32, G*F <= 1024."""
    g = 128 // math.gcd(F, 128)
    while g * 2 <= 32 and g * 2 * F <= 1024:
        g *= 2
    return g


@functools.partial(jax.jit, static_argnames=("block_rows",))
def proba_output_forward(x, weights, biases, *, block_rows=65536):
    """x: (B, F). weights: (Q, F) (one row per quantile Linear). biases: (Q,).

    Returns (B, Q, 1) matching the PyTorch module output.
    block_rows: original batch rows per grid step (sized so each step streams
    multiple MiB of x; rounded internally to packed-row granularity).
    """
    B, F = x.shape
    Q = weights.shape[0]

    # Keep the caller's dtype for x (f32 matches PyTorch exactly; bf16 halves
    # the HBM read stream for this memory-bound kernel).
    if x.dtype not in (jnp.float32, jnp.bfloat16):
        x = x.astype(jnp.float32)

    # ---- lane-dense row packing --------------------------------------------
    G = _pick_group(F)                          # 32 for F=32 -> 1024 lanes/row
    Bp = ((B + G - 1) // G) * G
    if Bp != B:
        x = jnp.pad(x, ((0, Bp - B), (0, 0)))   # zero rows, sliced off below
    rows_p = Bp // G
    xp = x.reshape(rows_p, G * F)               # zero-copy packed view

    wT = weights.astype(jnp.float32).T                          # (F, Q)
    w_bd = jnp.kron(jnp.eye(G, dtype=jnp.float32), wT)          # (G*F, G*Q)
    b_pk = jnp.tile(biases.astype(jnp.float32), G).reshape(1, G * Q)

    # ---- batch tile (in packed rows) ----------------------------------------
    tm_p = max(16, (block_rows // G) // 16 * 16)   # %16 so bf16 x also tiles
    if rows_p <= tm_p:
        tm_p = rows_p                              # single full-extent block
    grid = (pl.cdiv(rows_p, tm_p),)

    cost = pl.CostEstimate(
        flops=2 * B * F * Q,
        transcendentals=0,
        bytes_accessed=(B * F * x.dtype.itemsize
                        + (G * F) * (G * Q) * 4 + G * Q * 4
                        + B * Q * 4),
    )

    out_p = pl.pallas_call(
        _proba_output_kernel,
        out_shape=jax.ShapeDtypeStruct((rows_p, G * Q), jnp.float32),
        grid=grid,
        in_specs=[
            pl.BlockSpec((tm_p, G * F), lambda i: (i, 0)),    # streamed over batch
            pl.BlockSpec((G * F, G * Q), lambda i: (0, 0)),   # whole block-diag W
            pl.BlockSpec((1, G * Q), lambda i: (0, 0)),       # whole bias
        ],
        out_specs=pl.BlockSpec((tm_p, G * Q), lambda i: (i, 0)),
        compiler_params=pltpu.CompilerParams(
            # Independent batch tiles -> shard across TensorCores (v7x megacore).
            dimension_semantics=("parallel",),
            # Above v5e's 16 MiB / v6e-v7x's 32 MiB scoped defaults, below
            # v7x's 64 MiB physical VMEM; default tiles use ~22 MiB.
            vmem_limit_bytes=48 * 1024 * 1024,
        ),
        cost_estimate=cost,
    )(xp, w_bd, b_pk)

    # Unpack (rows_p, G*Q) -> (Bp, Q), drop padding, add trailing unit dim.
    out = out_p.reshape(Bp, Q)[:B]
    return out.reshape(B, Q, 1)


def _reference(x, weights, biases):
    x = x.astype(jnp.float32)
    return (x @ weights.T + biases[None, :]).reshape(x.shape[0], weights.shape[0], 1)


if __name__ == "__main__":
    # Small shapes consistent with the module: shape = (B, F)
    B, F = 2, 32
    quantiles = [0.05, 0.25, 0.5, 0.75, 0.95]
    Q = len(quantiles)

    key = jax.random.PRNGKey(0)
    kx, kw, kb = jax.random.split(key, 3)

    x = jax.random.normal(kx, (B, F), dtype=jnp.float32)

    # Deterministic init mimicking nn.Linear default: U(-1/sqrt(F), 1/sqrt(F))
    bound = 1.0 / jnp.sqrt(jnp.float32(F))
    weights = jax.random.uniform(kw, (Q, F), jnp.float32, -bound, bound)
    biases = jax.random.uniform(kb, (Q,), jnp.float32, -bound, bound)

    out = proba_output_forward(x, weights, biases)
    out = jax.block_until_ready(out)

    ref = _reference(x, weights, biases)
    assert out.shape == (B, Q, 1), out.shape
    assert jnp.allclose(out, ref, atol=1e-5, rtol=1e-5), "mismatch vs reference"

    # Secondary check: exercise the B-tiled path (multiple grid steps, padded
    # batch, partial last packed tile) with a small tile size.
    B2 = 5000
    x2 = jax.random.normal(jax.random.PRNGKey(1), (B2, F), dtype=jnp.float32)
    out2 = proba_output_forward(x2, weights, biases, block_rows=1024)
    out2 = jax.block_until_ready(out2)
    ref2 = _reference(x2, weights, biases)
    assert out2.shape == (B2, Q, 1), out2.shape
    assert jnp.allclose(out2, ref2, atol=1e-5, rtol=1e-5), "tiled mismatch"

    # Third check: bf16 x streaming path (halved HBM read), relaxed tolerance.
    x3 = x2.astype(jnp.bfloat16)
    out3 = jax.block_until_ready(
        proba_output_forward(x3, weights, biases, block_rows=1024))
    assert out3.shape == (B2, Q, 1), out3.shape
    assert jnp.allclose(out3, ref2, atol=3e-2, rtol=3e-2), "bf16 mismatch"

    print("KERNEL_OK")
</pallas_src>

<mosaic_0001>
module attributes {stable_mosaic.version = 11 : i64} {
  func.func @_proba_output_kernel(%arg0: i32, %arg1: memref<1x1024xf32, #tpu.memory_space<vmem>>, %arg2: memref<1024x160xf32, #tpu.memory_space<vmem>>, %arg3: memref<1x160xf32, #tpu.memory_space<vmem>>, %arg4: memref<1x160xf32, #tpu.memory_space<vmem>>) attributes {dimension_semantics = [#tpu.dimension_semantics<parallel>], iteration_bounds = array<i64: 1>, scalar_prefetch = 0 : i64, scratch_operands = 0 : i64, tpu.core_type = #tpu.core_type<tc>, window_params = [{transform_indices = @transform_0, window_bounds = array<i64: 1, 1024>}, {pipeline_mode = #tpu.pipeline_mode<synchronous>, transform_indices = @transform_1, window_bounds = array<i64: 1024, 160>}, {pipeline_mode = #tpu.pipeline_mode<synchronous>, transform_indices = @transform_2, window_bounds = array<i64: 1, 160>}, {transform_indices = @transform_3, window_bounds = array<i64: 1, 160>}]} {
    %c0 = arith.constant 0 : index
    %c0_0 = arith.constant 0 : index
    %0 = vector.load %arg1[%c0, %c0_0] : memref<1x1024xf32, #tpu.memory_space<vmem>>, vector<1x1024xf32>
    %c0_1 = arith.constant 0 : index
    %c0_2 = arith.constant 0 : index
    %1 = vector.load %arg2[%c0_1, %c0_2] : memref<1024x160xf32, #tpu.memory_space<vmem>>, vector<1024x160xf32>
    %cst = arith.constant dense<0.000000e+00> : vector<1x160xf32>
    %2 = tpu.matmul %0, %1, %cst {dimension_numbers = #tpu.dot_dimension_numbers<[1], [0], [0], [1], [0, 0, 1, 1], [], []>} : vector<1x1024xf32>, vector<1024x160xf32>, vector<1x160xf32> -> vector<1x160xf32>
    %c0_3 = arith.constant 0 : index
    %c0_4 = arith.constant 0 : index
    %3 = vector.load %arg3[%c0_3, %c0_4] : memref<1x160xf32, #tpu.memory_space<vmem>>, vector<1x160xf32>
    %4 = arith.addf %2, %3 : vector<1x160xf32>
    %c0_5 = arith.constant 0 : index
    %c0_6 = arith.constant 0 : index
    %5 = vector.load %arg4[%c0_5, %c0_6] : memref<1x160xf32, #tpu.memory_space<vmem>>, vector<1x160xf32>
    tpu.vector_store %arg4[%c0_5, %c0_6], %4 {strides = array<i32>} : memref<1x160xf32, #tpu.memory_space<vmem>>, vector<1x160xf32>,
    return
  }
  func.func @transform_0(%arg0: i32) -> (i32, i32) {
    %c0_i32 = arith.constant 0 : i32
    %c0_i32_0 = arith.constant 0 : i32
    return %arg0, %c0_i32 : i32, i32
  }
  func.func @transform_1(%arg0: i32) -> (i32, i32) {
    %c0_i32 = arith.constant 0 : i32
    %c0_i32_0 = arith.constant 0 : i32
    %c0_i32_1 = arith.constant 0 : i32
    return %c0_i32, %c0_i32_0 : i32, i32
  }
  func.func @transform_2(%arg0: i32) -> (i32, i32) {
    %c0_i32 = arith.constant 0 : i32
    %c0_i32_0 = arith.constant 0 : i32
    %c0_i32_1 = arith.constant 0 : i32
    return %c0_i32, %c0_i32_0 : i32, i32
  }
  func.func @transform_3(%arg0: i32) -> (i32, i32) {
    %c0_i32 = arith.constant 0 : i32
    %c0_i32_0 = arith.constant 0 : i32
    return %arg0, %c0_i32 : i32, i32
  }
}

</mosaic_0001>

<bundles_post_ra>
// kernel: tile.8
= control target key start
LH: loop header
LB: loop body
LE: loop exit
PB: predicated region body
PF: predicated region fallthrough
CT: control target
= control target key end

     0   :  { %s40_s0 = inlined_call_operand.vmem [shape: f32[5], index: 0, kind: input, shape index: {}]   ;;  %s41_s1 = inlined_call_operand.vmem [shape: f32[32,5], index: 1, kind: output, shape index: {}]  }
   0x1   :  { %v4_v0 = vld [vmem:[%s40_s0] ss:$0 sm:$0xff] }
   0x2   :  { %5 = vst [vmem:[%s41_s1] sm:$0xff] %v4_v0 }
   0x3   :  { %12 = vst [vmem:[%s41_s1 + $0x8] sm:$0xff] %v4_v0 }
   0x4   :  { %13 = vst [vmem:[%s41_s1 + $0x10] sm:$0xff] %v4_v0 }
   0x5   :  { %14 = vst [vmem:[%s41_s1 + $0x18] sm:$0xff] %v4_v0 }

// kernel: tile.9
= control target key start
LH: loop header
LB: loop body
LE: loop exit
PB: predicated region body
PF: predicated region fallthrough
CT: control target
= control target key end

     0   :  { %vm9_vm0 = vcmask 23552   ;;  %s280_s12 = smov 125   ;;  %s281_s13 = smov 115   ;;  %vm3_vm1 = vcmask 39936   ;;  %vm13_vm2 = vcmask 15360   ;;  %vm16_vm3 = vcmask 1048552   ;;  %s426_s0 = inlined_call_operand.vmem [shape: f32[32,5], index: 0, kind: input, shape index: {}]   ;;  %s427_s1 = inlined_call_operand.vmem [shape: f32[1,160], index: 1, kind: output, shape index: {}]  }
   0x1   :  { %v216_v0 = vld [vmem:[%s426_s0 + $0x19] sm:$0x1]   ;;  %v219_v3 = vld [vmem:[%s426_s0 + $0x17] sm:$0x1]   ;;  %v221_v4 = vld [vmem:[%s426_s0 + $0x15] sm:$0x1]  }
   0x2   :  { %v217_v1 = vld [vmem:[%s426_s0 + $0x19] sm:$0x1]   ;;  %26 = vrot.lane.b32.xlu1 %v219_v3, %s281_s13  ;;  %s282_s16 = smov 105   ;;  %v218_v5 = vld [vmem:[%s426_s0 + $0x18] sm:$0x1]   ;;  %s283_s21 = smov 120  }
   0x3   :  { %v10_v2 = vsel %vm9_vm0, %v217_v1, %v216_v0  ;;  %38 = vrot.lane.b32.xlu2 %v221_v4, %s282_s16  ;;  %v220_v6 = vld [vmem:[%s426_s0 + $0x16] sm:$0x1]   ;;  %s284_s22 = smov 110   ;;  %v222_v7 = vld [vmem:[%s426_s0 + $0x14] sm:$0x1]   ;;  %s285_s25 = smov 100  }
   0x4   :  { %11 = vrot.lane.b32.xlu0 %v10_v2, %s280_s12  ;;  %v223_v8 = vld [vmem:[%s426_s0 + $0x13] sm:$0x1]   ;;  %v224_v9 = vld [vmem:[%s426_s0 + $0x12] sm:$0x1]   ;;  %s286_s30 = smov 95   ;;  %s287_s2 = smov 90  }
   0x5   :  { %v225_v10 = vld [vmem:[%s426_s0 + $0x11] sm:$0x1]   ;;  %s288_s5 = smov 85   ;;  %v226_v11 = vld [vmem:[%s426_s0 + $0x10] sm:$0x1]   ;;  %s289_s10 = smov 80  }
   0x6   :  { %v227_v12 = vld [vmem:[%s426_s0 + $0xf] sm:$0x1]   ;;  %s290_s11 = smov 75   ;;  %v228_v13 = vld [vmem:[%s426_s0 + $0xe] sm:$0x1]   ;;  %s291_s14 = smov 70  }
   0x7   :  { %v229_v14 = vld [vmem:[%s426_s0 + $0xd] sm:$0x1]   ;;  %v230_v15 = vld [vmem:[%s426_s0 + $0xc] sm:$0x1]   ;;  %s292_s19 = smov 65   ;;  %s293_s20 = smov 60  }
   0x8   :  { %v231_v16 = vld [vmem:[%s426_s0 + $0xb] sm:$0x1]   ;;  %s294_s23 = smov 55   ;;  %v232_v17 = vld [vmem:[%s426_s0 + $0xa] sm:$0x1]   ;;  %s295_s28 = smov 50  }
   0x9   :  { %v233_v18 = vld [vmem:[%s426_s0 + $0x9] sm:$0x1]   ;;  %s296_s29 = smov 45   ;;  %v234_v19 = vld [vmem:[%s426_s0 + $0x8] sm:$0x1]   ;;  %s297_s3 = smov 40  }
   0xa   :  { %32 = vrot.lane.b32.xlu1 %v220_v6, %s284_s22  ;;  %v235_v20 = vld [vmem:[%s426_s0 + $0x7] sm:$0x1]   ;;  %v236_v21 = vld [vmem:[%s426_s0 + $0x6] sm:$0x1]   ;;  %s298_s8 = smov 35   ;;  %s299_s9 = smov 30  }
   0xb   :  { %44 = vrot.lane.b32.xlu2 %v222_v7, %s285_s25  ;;  %v237_v22 = vld [vmem:[%s426_s0 + $0x1f] sm:$0x1]   ;;  %s300_s12 = smov 27   ;;  %v238_v23 = vld [vmem:[%s426_s0 + $0x5] sm:$0x1]   ;;  %s301_s17 = smov 25  }
   0xc   :  { %20 = vrot.lane.b32.xlu0 %v218_v5, %s283_s21  ;;  %v239_v24 = vld [vmem:[%s426_s0 + $0x1e] sm:$0x1]   ;;  %s302_s18 = smov 22   ;;  %v240_v25 = vld [vmem:[%s426_s0 + $0x4] sm:$0x1]   ;;  %s303_s21 = smov 20  }
   0xd   :  { %v241_v26 = vld [vmem:[%s426_s0 + $0x1d] sm:$0x1]   ;;  %v242_v27 = vld [vmem:[%s426_s0 + $0x3] sm:$0x1]   ;;  %s304_s26 = smov 17   ;;  %s305_s27 = smov 15  }
   0xe   :  { %v243_v28 = vld [vmem:[%s426_s0 + $0x1c] sm:$0x1]   ;;  %v244_v29 = vld [vmem:[%s426_s0 + $0x2] sm:$0x1]   ;;  %v245_v30 = vld [vmem:[%s426_s0 + $0x1b] sm:$0x1]  }
   0xf   :  { %s307_s6 = smov 10   ;;  %s308_s7 = smov 7   ;;  %v246_v31 = vld [vmem:[%s426_s0 + $0x1] sm:$0x1]   ;;  %v247_v32 = vld [vmem:[%s426_s0 + $0x1a] sm:$0x1]  }
  0x10   :  { %s310_s13 = smov 2   ;;  %v2_v33 = vld [vmem:[%s426_s0] sm:$0x1]   ;;  %vm22_vm4 = vcmask 1023936   ;;  %vm28_vm5 = vcmask 982936   ;;  %vm34_vm6 = vcmask 941936  }
  0x11   :  { %4 = vst.msk [vmem:[#allocation0] sm:$0x1] %vm3_vm1, %v2_v33   ;;  %vm40_vm7 = vcmask 900936   ;;  %vm46_vm8 = vcmask 859936   ;;  %vm52_vm9 = vcmask 818936   ;;  %vm58_vm10 = vcmask 777936  }
  0x12   :  { %56 = vrot.lane.b32.xlu1 %v224_v9, %s287_s2  ;;  %vm64_vm11 = vcmask 736936   ;;  %vm70_vm12 = vcmask 695936   ;;  %vm76_vm13 = vcmask 654936   ;;  %vm82_vm14 = vcmask 613936  }
  0x13   :  { %62 = vrot.lane.b32.xlu2 %v225_v10, %s288_s5  ;;  %vm136_vm15 = vcmask 261336   ;;  %vm88_vm0 = vcmask 572936   ;;  %vm94_vm1 = vcmask 531936  }
  0x14   :  { %50 = vrot.lane.b32.xlu0 %v223_v8, %s286_s30  ;;  %s306_s30 = smov 12  }
  0x1a   :  { %74 = vrot.lane.b32.xlu1 %v227_v12, %s290_s11 }
  0x1b   :  { %80 = vrot.lane.b32.xlu2 %v228_v13, %s291_s14 }
  0x1c   :  { %68 = vrot.lane.b32.xlu0 %v226_v11, %s289_s10  ;;  %s309_s10 = smov 5  }
  0x22   :  { %92 = vrot.lane.b32.xlu1 %v230_v15, %s293_s20 }
  0x23   :  { %98 = vrot.lane.b32.xlu2 %v231_v16, %s294_s23 }
  0x24   :  { %86 = vrot.lane.b32.xlu0 %v229_v14, %s292_s19 }
  0x2a   :  { %110 = vrot.lane.b32.xlu1 %v233_v18, %s296_s29 }
  0x2b   :  { %116 = vrot.lane.b32.xlu2 %v234_v19, %s297_s3 }
  0x2c   :  { %104 = vrot.lane.b32.xlu0 %v232_v17, %s295_s28 }
  0x32   :  { %128 = vrot.lane.b32.xlu1 %v236_v21, %s299_s9 }
  0x33   :  { %134 = vrot.lane.b32.xlu2 %v237_v22, %s300_s12 }
  0x34   :  { %122 = vrot.lane.b32.xlu0 %v235_v20, %s298_s8 }
  0x3a   :  { %147 = vrot.lane.b32.xlu1 %v239_v24, %s302_s18 }
  0x3b   :  { %154 = vrot.lane.b32.xlu2 %v240_v25, %s303_s21 }
  0x3c   :  { %141 = vrot.lane.b32.xlu0 %v238_v23, %s301_s17 }
  0x42   :  { %167 = vrot.lane.b32.xlu1 %v242_v27, %s305_s27 }
  0x43   :  { %173 = vrot.lane.b32.xlu2 %v243_v28, %s306_s30 }
  0x44   :  { %160 = vrot.lane.b32.xlu0 %v241_v26, %s304_s26 }
  0x4a   :  { %186 = vrot.lane.b32.xlu1 %v245_v30, %s308_s7 }
  0x4b   :  { %193 = vrot.lane.b32.xlu2 %v246_v31, %s309_s10 }
  0x4c   :  { %180 = vrot.lane.b32.xlu0 %v244_v29, %s307_s6 }
  0x54   :  { %199 = vrot.lane.b32.xlu0 %v247_v32, %s310_s13 }
  0x5d   :  { %v39_v34 = vpop.permute.xlu2 %38  }
  0x65   :  { %v45_v35 = vpop.permute.xlu2 %44  }
  0x6d   :  { %v63_v36 = vpop.permute.xlu2 %62  }
  0x74   :  { %v27_v38 = vpop.permute.xlu1 %26  }
  0x75   :  { %v81_v39 = vpop.permute.xlu2 %80  }
  0x76   :  { %v12_v37 = vpop.permute.xlu0 %11  }
  0x77   :  { %15 = vst.msk [vmem:[#allocation0 + $0x8] sm:$0x1] %vm13_vm2, %v12_v37   ;;  %vm100_vm2 = vcmask 490936  }
  0x78   :  { %17 = vst.msk [vmem:[#allocation0] sm:$0x1] %vm16_vm3, %v12_v37   ;;  %vm106_vm3 = vcmask 449936  }
  0x7c   :  { %v33_v41 = vpop.permute.xlu1 %32  }
  0x7d   :  { %v99_v42 = vpop.permute.xlu2 %98  }
  0x7e   :  { %v21_v40 = vpop.permute.xlu0 %20  }
  0x7f   :  { %23 = vst.msk [vmem:[#allocation0] sm:$0x1] %vm22_vm4, %v21_v40   ;;  %vm112_vm4 = vcmask 408936  }
  0x80   :  { %29 = vst.msk [vmem:[#allocation0] sm:$0x1] %vm28_vm5, %v27_v38   ;;  %vm118_vm5 = vcmask 367936  }
  0x81   :  { %35 = vst.msk [vmem:[#allocation0] sm:$0x1] %vm34_vm6, %v33_v41   ;;  %vm124_vm6 = vcmask 326936  }
  0x82   :  { %41 = vst.msk [vmem:[#allocation0] sm:$0x1] %vm40_vm7, %v39_v34   ;;  %vm130_vm7 = vcmask 285936  }
  0x83   :  { %47 = vst.msk [vmem:[#allocation0] sm:$0x1] %vm46_vm8, %v45_v35   ;;  %vm143_vm8 = vcmask 244936  }
  0x84   :  { %v57_v44 = vpop.permute.xlu1 %56  }
  0x85   :  { %v117_v45 = vpop.permute.xlu2 %116  }
  0x86   :  { %v51_v43 = vpop.permute.xlu0 %50  }
  0x87   :  { %53 = vst.msk [vmem:[#allocation0] sm:$0x1] %vm52_vm9, %v51_v43   ;;  %vm149_vm9 = vcmask 220336  }
  0x88   :  { %59 = vst.msk [vmem:[#allocation0] sm:$0x1] %vm58_vm10, %v57_v44   ;;  %vm156_vm10 = vcmask 203936  }
  0x89   :  { %65 = vst.msk [vmem:[#allocation0] sm:$0x1] %vm64_vm11, %v63_v36   ;;  %vm162_vm11 = vcmask 179336  }
  0x8c   :  { %v75_v47 = vpop.permute.xlu1 %74  }
  0x8d   :  { %v135_v48 = vpop.permute.xlu2 %134  }
  0x8e   :  { %v69_v46 = vpop.permute.xlu0 %68   ;;  %138 = vst.msk [vmem:[#allocation0 + $0x8] sm:$0x1] %vm136_vm15, %v135_v48   ;;  %vm188_vm15 = vcmask 97336  }
  0x8f   :  { %71 = vst.msk [vmem:[#allocation0] sm:$0x1] %vm70_vm12, %v69_v46   ;;  %vm169_vm12 = vcmask 162936  }
  0x90   :  { %77 = vst.msk [vmem:[#allocation0] sm:$0x1] %vm76_vm13, %v75_v47   ;;  %vm175_vm13 = vcmask 138336  }
  0x91   :  { %83 = vst.msk [vmem:[#allocation0] sm:$0x1] %vm82_vm14, %v81_v39   ;;  %vm182_vm14 = vcmask 121936  }
  0x94   :  { %v93_v50 = vpop.permute.xlu1 %92  }
  0x95   :  { %v155_v51 = vpop.permute.xlu2 %154  }
  0x96   :  { %v87_v49 = vpop.permute.xlu0 %86  }
  0x97   :  { %89 = vst.msk [vmem:[#allocation0] sm:$0x1] %vm88_vm0, %v87_v49   ;;  %vm195_vm0 = vcmask 80936  }
  0x98   :  { %95 = vst.msk [vmem:[#allocation0] sm:$0x1] %vm94_vm1, %v93_v50   ;;  %vm201_vm1 = vcmask 56336  }
  0x99   :  { %101 = vst.msk [vmem:[#allocation0] sm:$0x1] %vm100_vm2, %v99_v42  }
  0x9c   :  { %v111_v53 = vpop.permute.xlu1 %110  }
  0x9d   :  { %v174_v54 = vpop.permute.xlu2 %173  }
  0x9e   :  { %v105_v52 = vpop.permute.xlu0 %104  }
  0x9f   :  { %107 = vst.msk [vmem:[#allocation0] sm:$0x1] %vm106_vm3, %v105_v52  }
  0xa0   :  { %113 = vst.msk [vmem:[#allocation0] sm:$0x1] %vm112_vm4, %v111_v53  }
  0xa1   :  { %119 = vst.msk [vmem:[#allocation0] sm:$0x1] %vm118_vm5, %v117_v45  }
  0xa4   :  { %v129_v56 = vpop.permute.xlu1 %128  }
  0xa5   :  { %v194_v57 = vpop.permute.xlu2 %193  }
  0xa6   :  { %v123_v55 = vpop.permute.xlu0 %122  }
  0xa7   :  { %125 = vst.msk [vmem:[#allocation0] sm:$0x1] %vm124_vm6, %v123_v55  }
  0xa8   :  { %131 = vst.msk [vmem:[#allocation0] sm:$0x1] %vm130_vm7, %v129_v56  }
  0xac   :  { %v148_v59 = vpop.permute.xlu1 %147  }
  0xad   :  { %151 = vst.msk [vmem:[#allocation0 + $0x8] sm:$0x1] %vm149_vm9, %v148_v59  }
  0xae   :  { %v142_v58 = vpop.permute.xlu0 %141  }
  0xaf   :  { %144 = vst.msk [vmem:[#allocation0] sm:$0x1] %vm143_vm8, %v142_v58  }
  0xb0   :  { %157 = vst.msk [vmem:[#allocation0] sm:$0x1] %vm156_vm10, %v155_v51  }
  0xb4   :  { %v168_v61 = vpop.permute.xlu1 %167  }
  0xb5   :  { %170 = vst.msk [vmem:[#allocation0] sm:$0x1] %vm169_vm12, %v168_v61  }
  0xb6   :  { %v161_v60 = vpop.permute.xlu0 %160  }
  0xb7   :  { %164 = vst.msk [vmem:[#allocation0 + $0x8] sm:$0x1] %vm162_vm11, %v161_v60  }
  0xb8   :  { %177 = vst.msk [vmem:[#allocation0 + $0x8] sm:$0x1] %vm175_vm13, %v174_v54  }
  0xbc   :  { %v187_v63 = vpop.permute.xlu1 %186  }
  0xbd   :  { %190 = vst.msk [vmem:[#allocation0 + $0x8] sm:$0x1] %vm188_vm15, %v187_v63  }
  0xbe   :  { %v181_v62 = vpop.permute.xlu0 %180  }
  0xbf   :  { %183 = vst.msk [vmem:[#allocation0] sm:$0x1] %vm182_vm14, %v181_v62  }
  0xc0   :  { %196 = vst.msk [vmem:[#allocation0] sm:$0x1] %vm195_vm0, %v194_v57  }
  0xc6   :  { %v200_v0 = vpop.permute.xlu0 %199  }
  0xc7   :  { %203 = vst.msk [vmem:[#allocation0 + $0x8] sm:$0x1] %vm201_vm1, %v200_v0   ;;  %v206_v1 = vld [vmem:[#allocation0] sm:$0x1] }
  0xc8   :  { %209 = vst [vmem:[%s427_s1] sm:$0x1] %v206_v1 }
  0xce   :  { %v211_v2 = vld [vmem:[#allocation0 + $0x8] sm:$0x1] }
  0xcf   :  { %248 = vst [vmem:[%s427_s1 + $0x1] sm:$0x1] %v211_v2 }

// kernel: proba_output_forward.1
= control target key start
LH: loop header
LB: loop body
LE: loop exit
PB: predicated region body
PF: predicated region fallthrough
CT: control target
= control target key end

     0   :  { %vm617_vm0 = vcmask 1040384   ;;  %s1468_s1 = inlined_call_operand.vmem [shape: f32[1024,160], index: 1, kind: input, shape index: {}]   ;;  %s1469_s0 = inlined_call_operand.vmem [shape: f32[1,1024], index: 0, kind: input, shape index: {}]   ;;  %s1470_s2 = inlined_call_operand.vmem [shape: f32[1,160], index: 2, kind: input, shape index: {}]   ;;  %s1471_s3 = inlined_call_operand.vmem [shape: f32[1,160], index: 3, kind: output, shape index: {}]  }
   0x1   :  { %v109_v0 = vld [vmem:[%s1468_s1 + $0x2f0] sm:$0xff]  ;;  %v107_v2 = vld [vmem:[%s1468_s1 + $0x2e0] sm:$0xff] }
   0x2   :  { %v45_v1 = vld [vmem:[%s1468_s1 + $0xf0] sm:$0xff]  ;;  %334 = vmatpush.msra.mxu2 %v109_v0  ;;  %v43_v4 = vld [vmem:[%s1468_s1 + $0xe0] sm:$0xff] }
   0x3   :  { %294 = vmatpush.msra.mxu0 %v45_v1  ;;  %v141_v3 = vld [vmem:[%s1468_s1 + $0x3f0] sm:$0xff]  ;;  %v139_v7 = vld [vmem:[%s1468_s1 + $0x3e0] sm:$0xff] }
   0x4   :  { %v77_v5 = vld [vmem:[%s1468_s1 + $0x1f0] sm:$0xff]  ;;  %354 = vmatpush.msra.mxu3 %v141_v3  ;;  %335 = vmatpush.msra.mxu2 %v107_v2  ;;  %v75_v9 = vld [vmem:[%s1468_s1 + $0x1e0] sm:$0xff] }
   0x5   :  { %314 = vmatpush.msra.mxu1 %v77_v5  ;;  %v105_v6 = vld [vmem:[%s1468_s1 + $0x2d0] sm:$0xff]  ;;  %295 = vmatpush.msra.mxu0 %v43_v4  ;;  %v103_v11 = vld [vmem:[%s1468_s1 + $0x2c0] sm:$0xff] }
   0x6   :  { %v41_v8 = vld [vmem:[%s1468_s1 + $0xd0] sm:$0xff]  ;;  %355 = vmatpush.msra.mxu3 %v139_v7  ;;  %v39_v12 = vld [vmem:[%s1468_s1 + $0xc0] sm:$0xff]  ;;  %336 = vmatpush.msra.mxu2 %v105_v6 }
   0x7   :  { %v137_v10 = vld [vmem:[%s1468_s1 + $0x3d0] sm:$0xff]  ;;  %315 = vmatpush.msra.mxu1 %v75_v9  ;;  %296 = vmatpush.msra.mxu0 %v41_v8  ;;  %v135_v14 = vld [vmem:[%s1468_s1 + $0x3c0] sm:$0xff] }
   0x8   :  { %v73_v13 = vld [vmem:[%s1468_s1 + $0x1d0] sm:$0xff]  ;;  %v71_v15 = vld [vmem:[%s1468_s1 + $0x1c0] sm:$0xff]  ;;  %356 = vmatpush.msra.mxu3 %v137_v10  ;;  %337 = vmatpush.msra.mxu2 %v103_v11 }
   0x9   :  { %316 = vmatpush.msra.mxu1 %v73_v13  ;;  %v101_v16 = vld [vmem:[%s1468_s1 + $0x2b0] sm:$0xff]  ;;  %297 = vmatpush.msra.mxu0 %v39_v12  ;;  %v99_v20 = vld [vmem:[%s1468_s1 + $0x2a0] sm:$0xff] }
   0xa   :  { %v37_v17 = vld [vmem:[%s1468_s1 + $0xb0] sm:$0xff]  ;;  %357 = vmatpush.msra.mxu3 %v135_v14  ;;  %v35_v21 = vld [vmem:[%s1468_s1 + $0xa0] sm:$0xff]  ;;  %338 = vmatpush.msra.mxu2 %v101_v16 }
   0xb   :  { %v133_v18 = vld [vmem:[%s1468_s1 + $0x3b0] sm:$0xff]  ;;  %317 = vmatpush.msra.mxu1 %v71_v15  ;;  %298 = vmatpush.msra.mxu0 %v37_v17  ;;  %v131_v22 = vld [vmem:[%s1468_s1 + $0x3a0] sm:$0xff] }
   0xc   :  { %v69_v19 = vld [vmem:[%s1468_s1 + $0x1b0] sm:$0xff]  ;;  %v67_v23 = vld [vmem:[%s1468_s1 + $0x1a0] sm:$0xff]  ;;  %358 = vmatpush.msra.mxu3 %v133_v18  ;;  %339 = vmatpush.msra.mxu2 %v99_v20 }
   0xd   :  { %318 = vmatpush.msra.mxu1 %v69_v19  ;;  %v97_v24 = vld [vmem:[%s1468_s1 + $0x290] sm:$0xff]  ;;  %299 = vmatpush.msra.mxu0 %v35_v21  ;;  %v95_v28 = vld [vmem:[%s1468_s1 + $0x280] sm:$0xff] }
   0xe   :  { %v33_v25 = vld [vmem:[%s1468_s1 + $0x90] sm:$0xff]  ;;  %359 = vmatpush.msra.mxu3 %v131_v22  ;;  %v31_v29 = vld [vmem:[%s1468_s1 + $0x80] sm:$0xff]  ;;  %340 = vmatpush.msra.mxu2 %v97_v24 }
   0xf   :  { %v129_v26 = vld [vmem:[%s1468_s1 + $0x390] sm:$0xff]  ;;  %319 = vmatpush.msra.mxu1 %v67_v23  ;;  %300 = vmatpush.msra.mxu0 %v33_v25  ;;  %v127_v30 = vld [vmem:[%s1468_s1 + $0x380] sm:$0xff] }
  0x10   :  { %v65_v27 = vld [vmem:[%s1468_s1 + $0x190] sm:$0xff]  ;;  %v63_v31 = vld [vmem:[%s1468_s1 + $0x180] sm:$0xff]  ;;  %360 = vmatpush.msra.mxu3 %v129_v26  ;;  %341 = vmatpush.msra.mxu2 %v95_v28 }
  0x11   :  { %320 = vmatpush.msra.mxu1 %v65_v27  ;;  %v93_v32 = vld [vmem:[%s1468_s1 + $0x270] sm:$0xff]  ;;  %301 = vmatpush.msra.mxu0 %v31_v29  ;;  %v91_v36 = vld [vmem:[%s1468_s1 + $0x260] sm:$0xff] }
  0x12   :  { %v29_v33 = vld [vmem:[%s1468_s1 + $0x70] sm:$0xff]  ;;  %361 = vmatpush.msra.mxu3 %v127_v30  ;;  %v27_v37 = vld [vmem:[%s1468_s1 + $0x60] sm:$0xff]  ;;  %342 = vmatpush.msra.mxu2 %v93_v32 }
  0x13   :  { %v125_v34 = vld [vmem:[%s1468_s1 + $0x370] sm:$0xff]  ;;  %321 = vmatpush.msra.mxu1 %v63_v31  ;;  %302 = vmatpush.msra.mxu0 %v29_v33  ;;  %v123_v38 = vld [vmem:[%s1468_s1 + $0x360] sm:$0xff] }
  0x14   :  { %v61_v35 = vld [vmem:[%s1468_s1 + $0x170] sm:$0xff]  ;;  %v59_v39 = vld [vmem:[%s1468_s1 + $0x160] sm:$0xff]  ;;  %362 = vmatpush.msra.mxu3 %v125_v34  ;;  %343 = vmatpush.msra.mxu2 %v91_v36 }
  0x15   :  { %322 = vmatpush.msra.mxu1 %v61_v35  ;;  %v89_v40 = vld [vmem:[%s1468_s1 + $0x250] sm:$0xff]  ;;  %303 = vmatpush.msra.mxu0 %v27_v37  ;;  %v87_v44 = vld [vmem:[%s1468_s1 + $0x240] sm:$0xff] }
  0x16   :  { %v25_v41 = vld [vmem:[%s1468_s1 + $0x50] sm:$0xff]  ;;  %363 = vmatpush.msra.mxu3 %v123_v38  ;;  %v23_v45 = vld [vmem:[%s1468_s1 + $0x40] sm:$0xff]  ;;  %344 = vmatpush.msra.mxu2 %v89_v40 }
  0x17   :  { %v121_v42 = vld [vmem:[%s1468_s1 + $0x350] sm:$0xff]  ;;  %323 = vmatpush.msra.mxu1 %v59_v39  ;;  %304 = vmatpush.msra.mxu0 %v25_v41  ;;  %v119_v46 = vld [vmem:[%s1468_s1 + $0x340] sm:$0xff] }
  0x18   :  { %v57_v43 = vld [vmem:[%s1468_s1 + $0x150] sm:$0xff]  ;;  %v55_v47 = vld [vmem:[%s1468_s1 + $0x140] sm:$0xff]  ;;  %364 = vmatpush.msra.mxu3 %v121_v42  ;;  %345 = vmatpush.msra.mxu2 %v87_v44 }
  0x19   :  { %324 = vmatpush.msra.mxu1 %v57_v43  ;;  %v85_v48 = vld [vmem:[%s1468_s1 + $0x230] sm:$0xff]  ;;  %305 = vmatpush.msra.mxu0 %v23_v45  ;;  %v83_v52 = vld [vmem:[%s1468_s1 + $0x220] sm:$0xff] }
  0x1a   :  { %v21_v49 = vld [vmem:[%s1468_s1 + $0x30] sm:$0xff]  ;;  %365 = vmatpush.msra.mxu3 %v119_v46  ;;  %v19_v53 = vld [vmem:[%s1468_s1 + $0x20] sm:$0xff]  ;;  %346 = vmatpush.msra.mxu2 %v85_v48 }
  0x1b   :  { %v117_v50 = vld [vmem:[%s1468_s1 + $0x330] sm:$0xff]  ;;  %325 = vmatpush.msra.mxu1 %v55_v47  ;;  %306 = vmatpush.msra.mxu0 %v21_v49  ;;  %v115_v54 = vld [vmem:[%s1468_s1 + $0x320] sm:$0xff] }
  0x1c   :  { %v53_v51 = vld [vmem:[%s1468_s1 + $0x130] sm:$0xff]  ;;  %v51_v55 = vld [vmem:[%s1468_s1 + $0x120] sm:$0xff]  ;;  %366 = vmatpush.msra.mxu3 %v117_v50  ;;  %347 = vmatpush.msra.mxu2 %v83_v52 }
  0x1d   :  { %326 = vmatpush.msra.mxu1 %v53_v51  ;;  %v81_v56 = vld [vmem:[%s1468_s1 + $0x210] sm:$0xff]  ;;  %307 = vmatpush.msra.mxu0 %v19_v53  ;;  %v79_v60 = vld [vmem:[%s1468_s1 + $0x200] sm:$0xff] }
  0x1e   :  { %v17_v57 = vld [vmem:[%s1468_s1 + $0x10] sm:$0xff]  ;;  %367 = vmatpush.msra.mxu3 %v115_v54  ;;  %v15_v61 = vld [vmem:[%s1468_s1] sm:$0xff]  ;;  %348 = vmatpush.msra.mxu2 %v81_v56 }
  0x1f   :  { %v113_v58 = vld [vmem:[%s1468_s1 + $0x310] sm:$0xff]  ;;  %327 = vmatpush.msra.mxu1 %v51_v55  ;;  %308 = vmatpush.msra.mxu0 %v17_v57  ;;  %v111_v63 = vld [vmem:[%s1468_s1 + $0x300] sm:$0xff] }
  0x20   :  { %v49_v59 = vld [vmem:[%s1468_s1 + $0x110] sm:$0xff]  ;;  %368 = vmatpush.msra.mxu3 %v113_v58  ;;  %349 = vmatpush.msra.mxu2 %v79_v60  ;;  %v235_v2 = vld [vmem:[%s1468_s1 + $0x6e0] sm:$0xff] }
  0x21   :  { %v237_v62 = vld [vmem:[%s1468_s1 + $0x6f0] sm:$0xff]  ;;  %328 = vmatpush.msra.mxu1 %v49_v59  ;;  %309 = vmatpush.msra.mxu0 %v15_v61  ;;  %v47_v3 = vld [vmem:[%s1468_s1 + $0x100] sm:$0xff] }
  0x22   :  { %v173_v0 = vld [vmem:[%s1468_s1 + $0x4f0] sm:$0xff]  ;;  %414 = vmatpush.msrb.mxu2 %v237_v62  ;;  %369 = vmatpush.msra.mxu3 %v111_v63  ;;  %v171_v4 = vld [vmem:[%s1468_s1 + $0x4e0] sm:$0xff]  ;;  %v110_v63 = vld [vmem:[%s1468_s1 + $0x2f8] sm:$0xff] }
  0x23   :  { %v269_v1 = vld [vmem:[%s1468_s1 + $0x7f0] sm:$0xff]  ;;  %374 = vmatpush.msrb.mxu0 %v173_v0  ;;  %v267_v7 = vld [vmem:[%s1468_s1 + $0x7e0] sm:$0xff]  ;;  %329 = vmatpush.msra.mxu1 %v47_v3 }
  0x24   :  { %v205_v5 = vld [vmem:[%s1468_s1 + $0x5f0] sm:$0xff]  ;;  %434 = vmatpush.msrb.mxu3 %v269_v1  ;;  %415 = vmatpush.msrb.mxu2 %v235_v2  ;;  %v203_v9 = vld [vmem:[%s1468_s1 + $0x5e0] sm:$0xff] }
  0x25   :  { %v233_v6 = vld [vmem:[%s1468_s1 + $0x6d0] sm:$0xff]  ;;  %375 = vmatpush.msrb.mxu0 %v171_v4  ;;  %394 = vmatpush.msrb.mxu1 %v205_v5  ;;  %v231_v10 = vld [vmem:[%s1468_s1 + $0x6c0] sm:$0xff]  ;;  %v46_v4 = vld [vmem:[%s1468_s1 + $0xf8] sm:$0xff] }
  0x26   :  { %v169_v8 = vld [vmem:[%s1468_s1 + $0x4d0] sm:$0xff]  ;;  %416 = vmatpush.msrb.mxu2 %v233_v6  ;;  %435 = vmatpush.msrb.mxu3 %v267_v7  ;;  %v167_v12 = vld [vmem:[%s1468_s1 + $0x4c0] sm:$0xff]  ;;  %v108_v5 = vld [vmem:[%s1468_s1 + $0x2e8] sm:$0xff] }
  0x27   :  { %v265_v11 = vld [vmem:[%s1468_s1 + $0x7d0] sm:$0xff]  ;;  %376 = vmatpush.msrb.mxu0 %v169_v8  ;;  %395 = vmatpush.msrb.mxu1 %v203_v9  ;;  %v263_v15 = vld [vmem:[%s1468_s1 + $0x7c0] sm:$0xff]  ;;  %v142_v6 = vld [vmem:[%s1468_s1 + $0x3f8] sm:$0xff] }
  0x28   :  { %v201_v13 = vld [vmem:[%s1468_s1 + $0x5d0] sm:$0xff]  ;;  %417 = vmatpush.msrb.mxu2 %v231_v10  ;;  %436 = vmatpush.msrb.mxu3 %v265_v11  ;;  %v199_v17 = vld [vmem:[%s1468_s1 + $0x5c0] sm:$0xff]  ;;  %v44_v9 = vld [vmem:[%s1468_s1 + $0xe8] sm:$0xff] }
  0x29   :  { %v229_v14 = vld [vmem:[%s1468_s1 + $0x6b0] sm:$0xff]  ;;  %377 = vmatpush.msrb.mxu0 %v167_v12  ;;  %396 = vmatpush.msrb.mxu1 %v201_v13  ;;  %v227_v18 = vld [vmem:[%s1468_s1 + $0x6a0] sm:$0xff]  ;;  %v106_v10 = vld [vmem:[%s1468_s1 + $0x2d8] sm:$0xff] }
  0x2a   :  { %v165_v16 = vld [vmem:[%s1468_s1 + $0x4b0] sm:$0xff]  ;;  %418 = vmatpush.msrb.mxu2 %v229_v14  ;;  %437 = vmatpush.msrb.mxu3 %v263_v15  ;;  %v163_v20 = vld [vmem:[%s1468_s1 + $0x4a0] sm:$0xff]  ;;  %v78_v11 = vld [vmem:[%s1468_s1 + $0x1f8] sm:$0xff] }
  0x2b   :  { %v261_v19 = vld [vmem:[%s1468_s1 + $0x7b0] sm:$0xff]  ;;  %378 = vmatpush.msrb.mxu0 %v165_v16  ;;  %397 = vmatpush.msrb.mxu1 %v199_v17  ;;  %v259_v23 = vld [vmem:[%s1468_s1 + $0x7a0] sm:$0xff]  ;;  %v140_v12 = vld [vmem:[%s1468_s1 + $0x3e8] sm:$0xff] }
  0x2c   :  { %v197_v21 = vld [vmem:[%s1468_s1 + $0x5b0] sm:$0xff]  ;;  %419 = vmatpush.msrb.mxu2 %v227_v18  ;;  %438 = vmatpush.msrb.mxu3 %v261_v19  ;;  %v195_v25 = vld [vmem:[%s1468_s1 + $0x5a0] sm:$0xff]  ;;  %v42_v13 = vld [vmem:[%s1468_s1 + $0xd8] sm:$0xff] }
  0x2d   :  { %v225_v22 = vld [vmem:[%s1468_s1 + $0x690] sm:$0xff]  ;;  %379 = vmatpush.msrb.mxu0 %v163_v20  ;;  %398 = vmatpush.msrb.mxu1 %v197_v21  ;;  %v223_v26 = vld [vmem:[%s1468_s1 + $0x680] sm:$0xff]  ;;  %v104_v14 = vld [vmem:[%s1468_s1 + $0x2c8] sm:$0xff] }
  0x2e   :  { %v161_v24 = vld [vmem:[%s1468_s1 + $0x490] sm:$0xff]  ;;  %420 = vmatpush.msrb.mxu2 %v225_v22  ;;  %439 = vmatpush.msrb.mxu3 %v259_v23  ;;  %v159_v28 = vld [vmem:[%s1468_s1 + $0x480] sm:$0xff]  ;;  %v76_v15 = vld [vmem:[%s1468_s1 + $0x1e8] sm:$0xff] }
  0x2f   :  { %v257_v27 = vld [vmem:[%s1468_s1 + $0x790] sm:$0xff]  ;;  %380 = vmatpush.msrb.mxu0 %v161_v24  ;;  %399 = vmatpush.msrb.mxu1 %v195_v25  ;;  %v255_v31 = vld [vmem:[%s1468_s1 + $0x780] sm:$0xff]  ;;  %v138_v16 = vld [vmem:[%s1468_s1 + $0x3d8] sm:$0xff] }
  0x30   :  { %v193_v29 = vld [vmem:[%s1468_s1 + $0x590] sm:$0xff]  ;;  %421 = vmatpush.msrb.mxu2 %v223_v26  ;;  %440 = vmatpush.msrb.mxu3 %v257_v27  ;;  %v191_v33 = vld [vmem:[%s1468_s1 + $0x580] sm:$0xff]  ;;  %v40_v18 = vld [vmem:[%s1468_s1 + $0xc8] sm:$0xff] }
  0x31   :  { %v221_v30 = vld [vmem:[%s1468_s1 + $0x670] sm:$0xff]  ;;  %381 = vmatpush.msrb.mxu0 %v159_v28  ;;  %400 = vmatpush.msrb.mxu1 %v193_v29  ;;  %v219_v34 = vld [vmem:[%s1468_s1 + $0x660] sm:$0xff]  ;;  %v74_v19 = vld [vmem:[%s1468_s1 + $0x1d8] sm:$0xff] }
  0x32   :  { %v157_v32 = vld [vmem:[%s1468_s1 + $0x470] sm:$0xff]  ;;  %422 = vmatpush.msrb.mxu2 %v221_v30  ;;  %441 = vmatpush.msrb.mxu3 %v255_v31  ;;  %v155_v36 = vld [vmem:[%s1468_s1 + $0x460] sm:$0xff]  ;;  %v102_v20 = vld [vmem:[%s1468_s1 + $0x2b8] sm:$0xff] }
  0x33   :  { %v253_v35 = vld [vmem:[%s1468_s1 + $0x770] sm:$0xff]  ;;  %382 = vmatpush.msrb.mxu0 %v157_v32  ;;  %401 = vmatpush.msrb.mxu1 %v191_v33  ;;  %v251_v39 = vld [vmem:[%s1468_s1 + $0x760] sm:$0xff]  ;;  %v136_v22 = vld [vmem:[%s1468_s1 + $0x3c8] sm:$0xff] }
  0x34   :  { %v189_v37 = vld [vmem:[%s1468_s1 + $0x570] sm:$0xff]  ;;  %423 = vmatpush.msrb.mxu2 %v219_v34  ;;  %442 = vmatpush.msrb.mxu3 %v253_v35  ;;  %v187_v41 = vld [vmem:[%s1468_s1 + $0x560] sm:$0xff]  ;;  %v38_v24 = vld [vmem:[%s1468_s1 + $0xb8] sm:$0xff] }
  0x35   :  { %v217_v38 = vld [vmem:[%s1468_s1 + $0x650] sm:$0xff]  ;;  %383 = vmatpush.msrb.mxu0 %v155_v36  ;;  %402 = vmatpush.msrb.mxu1 %v189_v37  ;;  %v215_v42 = vld [vmem:[%s1468_s1 + $0x640] sm:$0xff]  ;;  %v72_v25 = vld [vmem:[%s1468_s1 + $0x1c8] sm:$0xff] }
  0x36   :  { %v153_v40 = vld [vmem:[%s1468_s1 + $0x450] sm:$0xff]  ;;  %424 = vmatpush.msrb.mxu2 %v217_v38  ;;  %443 = vmatpush.msrb.mxu3 %v251_v39  ;;  %v151_v44 = vld [vmem:[%s1468_s1 + $0x440] sm:$0xff]  ;;  %v100_v26 = vld [vmem:[%s1468_s1 + $0x2a8] sm:$0xff] }
  0x37   :  { %v249_v43 = vld [vmem:[%s1468_s1 + $0x750] sm:$0xff]  ;;  %384 = vmatpush.msrb.mxu0 %v153_v40  ;;  %403 = vmatpush.msrb.mxu1 %v187_v41  ;;  %v247_v47 = vld [vmem:[%s1468_s1 + $0x740] sm:$0xff]  ;;  %v134_v28 = vld [vmem:[%s1468_s1 + $0x3b8] sm:$0xff] }
  0x38   :  { %v185_v45 = vld [vmem:[%s1468_s1 + $0x550] sm:$0xff]  ;;  %425 = vmatpush.msrb.mxu2 %v215_v42  ;;  %444 = vmatpush.msrb.mxu3 %v249_v43  ;;  %v183_v49 = vld [vmem:[%s1468_s1 + $0x540] sm:$0xff]  ;;  %v36_v29 = vld [vmem:[%s1468_s1 + $0xa8] sm:$0xff] }
  0x39   :  { %v213_v46 = vld [vmem:[%s1468_s1 + $0x630] sm:$0xff]  ;;  %385 = vmatpush.msrb.mxu0 %v151_v44  ;;  %404 = vmatpush.msrb.mxu1 %v185_v45  ;;  %v211_v50 = vld [vmem:[%s1468_s1 + $0x620] sm:$0xff]  ;;  %v70_v30 = vld [vmem:[%s1468_s1 + $0x1b8] sm:$0xff] }
  0x3a   :  { %v149_v48 = vld [vmem:[%s1468_s1 + $0x430] sm:$0xff]  ;;  %426 = vmatpush.msrb.mxu2 %v213_v46  ;;  %445 = vmatpush.msrb.mxu3 %v247_v47  ;;  %v147_v52 = vld [vmem:[%s1468_s1 + $0x420] sm:$0xff]  ;;  %v98_v31 = vld [vmem:[%s1468_s1 + $0x298] sm:$0xff] }
  0x3b   :  { %v245_v51 = vld [vmem:[%s1468_s1 + $0x730] sm:$0xff]  ;;  %v1006_v54 = vld [vmem:[%s1469_s0] sm:$0xff]  ;;  %386 = vmatpush.msrb.mxu0 %v149_v48  ;;  %405 = vmatpush.msrb.mxu1 %v183_v49  ;;  %v132_v32 = vld [vmem:[%s1468_s1 + $0x3a8] sm:$0xff] }
  0x3c   :  { %v181_v53 = vld [vmem:[%s1468_s1 + $0x530] sm:$0xff]  ;;  %v243_v56 = vld [vmem:[%s1468_s1 + $0x720] sm:$0xff]  ;;  %427 = vmatpush.msrb.mxu2 %v211_v50  ;;  %446 = vmatpush.msrb.mxu3 %v245_v51  ;;  %v275_v61 = vperm.slane %v1006_v54, 2  ;;  %v273_v1 = vperm.slane %v1006_v54, 0  ;;  %v276_v3 = vperm.slane %v1006_v54, 3  ;;  %v274_v8 = vperm.slane %v1006_v54, 1 }
  0x3d   :  { %v209_v55 = vld [vmem:[%s1468_s1 + $0x610] sm:$0xff]  ;;  %v179_v58 = vld [vmem:[%s1468_s1 + $0x520] sm:$0xff]  ;;  %387 = vmatpush.msrb.mxu0 %v147_v52  ;;  %406 = vmatpush.msrb.mxu1 %v181_v53  ;;  %v279_v17 = vperm.slane %v1006_v54, 6  ;;  %v277_v21 = vperm.slane %v1006_v54, 4  ;;  %v280_v23 = vperm.slane %v1006_v54, 7  ;;  %v278_v27 = vperm.slane %v1006_v54, 5 }
  0x3e   :  { %v145_v57 = vld [vmem:[%s1468_s1 + $0x410] sm:$0xff]  ;;  %v207_v59 = vld [vmem:[%s1468_s1 + $0x600] sm:$0xff]  ;;  %428 = vmatpush.msrb.mxu2 %v209_v55  ;;  %447 = vmatpush.msrb.mxu3 %v243_v56  ;;  %v34_v33 = vld [vmem:[%s1468_s1 + $0x98] sm:$0xff] }
  0x3f   :  { %v241_v60 = vld [vmem:[%s1468_s1 + $0x710] sm:$0xff]  ;;  %v143_v62 = vld [vmem:[%s1468_s1 + $0x400] sm:$0xff]  ;;  %388 = vmatpush.msrb.mxu0 %v145_v57  ;;  %407 = vmatpush.msrb.mxu1 %v179_v58  ;;  %v68_v34 = vld [vmem:[%s1468_s1 + $0x1a8] sm:$0xff] }
  0x40   :  { %v177_v0 = vld [vmem:[%s1468_s1 + $0x510] sm:$0xff]  ;;  %429 = vmatpush.msrb.mxu2 %v207_v59  ;;  %448 = vmatpush.msrb.mxu3 %v241_v60  ;;  %v239_v2 = vld [vmem:[%s1468_s1 + $0x700] sm:$0xff]  ;;  %v96_v35 = vld [vmem:[%s1468_s1 + $0x288] sm:$0xff] }
  0x41   :  { %350 = vmatmul.f32.vlgmr.msra.gmra.mxu2 %v275_v61  ;;  %389 = vmatpush.msrb.mxu0 %v143_v62  ;;  %v175_v7 = vld [vmem:[%s1468_s1 + $0x500] sm:$0xff]  ;;  %v130_v36 = vld [vmem:[%s1468_s1 + $0x398] sm:$0xff]  ;;  %v32_v37 = vld [vmem:[%s1468_s1 + $0x88] sm:$0xff] }
  0x42   :  { %494 = vmatpush.msra.mxu2 %v110_v63  ;;  %408 = vmatpush.msrb.mxu1 %v177_v0  ;;  %v66_v38 = vld [vmem:[%s1468_s1 + $0x198] sm:$0xff]  ;;  %v128_v40 = vld [vmem:[%s1468_s1 + $0x388] sm:$0xff] }
  0x43   :  { %449 = vmatpush.msrb.mxu3 %v239_v2  ;;  %310 = vmatmul.f32.vlgmr.msra.gmra.mxu0 %v273_v1  ;;  %v94_v39 = vld [vmem:[%s1468_s1 + $0x278] sm:$0xff]  ;;  %v64_v42 = vld [vmem:[%s1468_s1 + $0x188] sm:$0xff] }
  0x44   :  { %370 = vmatmul.f32.vlgmr.msra.gmra.mxu3 %v276_v3  ;;  %454 = vmatpush.msra.mxu0 %v46_v4  ;;  %v30_v41 = vld [vmem:[%s1468_s1 + $0x78] sm:$0xff]  ;;  %v92_v43 = vld [vmem:[%s1468_s1 + $0x268] sm:$0xff] }
  0x45   :  { %495 = vmatpush.msra.mxu2 %v108_v5  ;;  %514 = vmatpush.msra.mxu3 %v142_v6  ;;  %v126_v44 = vld [vmem:[%s1468_s1 + $0x378] sm:$0xff]  ;;  %v28_v45 = vld [vmem:[%s1468_s1 + $0x68] sm:$0xff] }
  0x46   :  { %409 = vmatpush.msrb.mxu1 %v175_v7  ;;  %455 = vmatpush.msra.mxu0 %v44_v9  ;;  %v62_v46 = vld [vmem:[%s1468_s1 + $0x178] sm:$0xff]  ;;  %v124_v48 = vld [vmem:[%s1468_s1 + $0x368] sm:$0xff] }
  0x47   :  { %330 = vmatmul.f32.vlgmr.msra.gmra.mxu1 %v274_v8  ;;  %496 = vmatpush.msra.mxu2 %v106_v10  ;;  %v90_v47 = vld [vmem:[%s1468_s1 + $0x258] sm:$0xff]  ;;  %v60_v50 = vld [vmem:[%s1468_s1 + $0x168] sm:$0xff] }
  0x48   :  { %474 = vmatpush.msra.mxu1 %v78_v11  ;;  %515 = vmatpush.msra.mxu3 %v140_v12  ;;  %v26_v49 = vld [vmem:[%s1468_s1 + $0x58] sm:$0xff]  ;;  %v88_v51 = vld [vmem:[%s1468_s1 + $0x248] sm:$0xff] }
  0x49   :  { %456 = vmatpush.msra.mxu0 %v42_v13  ;;  %497 = vmatpush.msra.mxu2 %v104_v14  ;;  %v122_v52 = vld [vmem:[%s1468_s1 + $0x358] sm:$0xff]  ;;  %v24_v53 = vld [vmem:[%s1468_s1 + $0x48] sm:$0xff] }
  0x4a   :  { %475 = vmatpush.msra.mxu1 %v76_v15  ;;  %516 = vmatpush.msra.mxu3 %v138_v16  ;;  %v58_v55 = vld [vmem:[%s1468_s1 + $0x158] sm:$0xff]  ;;  %v120_v57 = vld [vmem:[%s1468_s1 + $0x348] sm:$0xff] }
  0x4b   :  { %430 = vmatmul.f32.vlgmr.msrb.gmra.mxu2 %v279_v17  ;;  %457 = vmatpush.msra.mxu0 %v40_v18  ;;  %v86_v56 = vld [vmem:[%s1468_s1 + $0x238] sm:$0xff]  ;;  %v56_v59 = vld [vmem:[%s1468_s1 + $0x148] sm:$0xff] }
  0x4c   :  { %476 = vmatpush.msra.mxu1 %v74_v19  ;;  %498 = vmatpush.msra.mxu2 %v102_v20  ;;  %v22_v58 = vld [vmem:[%s1468_s1 + $0x38] sm:$0xff]  ;;  %v84_v60 = vld [vmem:[%s1468_s1 + $0x228] sm:$0xff] }
  0x4d   :  { %517 = vmatpush.msra.mxu3 %v136_v22  ;;  %390 = vmatmul.f32.vlgmr.msrb.gmra.mxu0 %v277_v21  ;;  %v118_v62 = vld [vmem:[%s1468_s1 + $0x338] sm:$0xff]  ;;  %v20_v63 = vld [vmem:[%s1468_s1 + $0x28] sm:$0xff] }
  0x4e   :  { %450 = vmatmul.f32.vlgmr.msrb.gmra.mxu3 %v280_v23  ;;  %458 = vmatpush.msra.mxu0 %v38_v24  ;;  %v54_v0 = vld [vmem:[%s1468_s1 + $0x138] sm:$0xff]  ;;  %v116_v4 = vld [vmem:[%s1468_s1 + $0x328] sm:$0xff] }
  0x4f   :  { %477 = vmatpush.msra.mxu1 %v72_v25  ;;  %499 = vmatpush.msra.mxu2 %v100_v26  ;;  %v82_v2 = vld [vmem:[%s1468_s1 + $0x218] sm:$0xff]  ;;  %v52_v6 = vld [vmem:[%s1468_s1 + $0x128] sm:$0xff] }
  0x50   :  { %518 = vmatpush.msra.mxu3 %v134_v28  ;;  %410 = vmatmul.f32.vlgmr.msrb.gmra.mxu1 %v278_v27  ;;  %v18_v5 = vld [vmem:[%s1468_s1 + $0x18] sm:$0xff]  ;;  %v80_v7 = vld [vmem:[%s1468_s1 + $0x208] sm:$0xff] }
  0x51   :  { %459 = vmatpush.msra.mxu0 %v36_v29  ;;  %478 = vmatpush.msra.mxu1 %v70_v30  ;;  %v114_v9 = vld [vmem:[%s1468_s1 + $0x318] sm:$0xff]  ;;  %v16_v11 = vld [vmem:[%s1468_s1 + $0x8] sm:$0xff] }
  0x52   :  { %500 = vmatpush.msra.mxu2 %v98_v31  ;;  %519 = vmatpush.msra.mxu3 %v132_v32  ;;  %v238_v10 = vld [vmem:[%s1468_s1 + $0x6f8] sm:$0xff]  ;;  %v112_v13 = vld [vmem:[%s1468_s1 + $0x308] sm:$0xff] }
  0x53   :  { %460 = vmatpush.msra.mxu0 %v34_v33  ;;  %479 = vmatpush.msra.mxu1 %v68_v34  ;;  %v50_v12 = vld [vmem:[%s1468_s1 + $0x118] sm:$0xff]  ;;  %v236_v15 = vld [vmem:[%s1468_s1 + $0x6e8] sm:$0xff] }
  0x54   :  { %501 = vmatpush.msra.mxu2 %v96_v35  ;;  %520 = vmatpush.msra.mxu3 %v130_v36  ;;  %v174_v14 = vld [vmem:[%s1468_s1 + $0x4f8] sm:$0xff]  ;;  %v48_v18 = vld [vmem:[%s1468_s1 + $0x108] sm:$0xff] }
  0x55   :  { %461 = vmatpush.msra.mxu0 %v32_v37  ;;  %480 = vmatpush.msra.mxu1 %v66_v38  ;;  %v270_v16 = vld [vmem:[%s1468_s1 + $0x7f8] sm:$0xff]  ;;  %v172_v19 = vld [vmem:[%s1468_s1 + $0x4e8] sm:$0xff] }
  0x56   :  { %502 = vmatpush.msra.mxu2 %v94_v39  ;;  %521 = vmatpush.msra.mxu3 %v128_v40  ;;  %v206_v20 = vld [vmem:[%s1468_s1 + $0x5f8] sm:$0xff]  ;;  %v268_v24 = vld [vmem:[%s1468_s1 + $0x7e8] sm:$0xff] }
  0x57   :  { %462 = vmatpush.msra.mxu0 %v30_v41  ;;  %481 = vmatpush.msra.mxu1 %v64_v42  ;;  %v234_v22 = vld [vmem:[%s1468_s1 + $0x6d8] sm:$0xff]  ;;  %v204_v26 = vld [vmem:[%s1468_s1 + $0x5e8] sm:$0xff] }
  0x58   :  { %503 = vmatpush.msra.mxu2 %v92_v43  ;;  %522 = vmatpush.msra.mxu3 %v126_v44  ;;  %v170_v25 = vld [vmem:[%s1468_s1 + $0x4d8] sm:$0xff]  ;;  %v232_v28 = vld [vmem:[%s1468_s1 + $0x6c8] sm:$0xff] }
  0x59   :  { %463 = vmatpush.msra.mxu0 %v28_v45  ;;  %482 = vmatpush.msra.mxu1 %v62_v46  ;;  %v266_v29 = vld [vmem:[%s1468_s1 + $0x7d8] sm:$0xff]  ;;  %v168_v30 = vld [vmem:[%s1468_s1 + $0x4c8] sm:$0xff] }
  0x5a   :  { %504 = vmatpush.msra.mxu2 %v90_v47  ;;  %523 = vmatpush.msra.mxu3 %v124_v48  ;;  %v202_v31 = vld [vmem:[%s1468_s1 + $0x5d8] sm:$0xff]  ;;  %v264_v33 = vld [vmem:[%s1468_s1 + $0x7c8] sm:$0xff] }
  0x5b   :  { %464 = vmatpush.msra.mxu0 %v26_v49  ;;  %483 = vmatpush.msra.mxu1 %v60_v50  ;;  %v230_v32 = vld [vmem:[%s1468_s1 + $0x6b8] sm:$0xff]  ;;  %v200_v35 = vld [vmem:[%s1468_s1 + $0x5c8] sm:$0xff] }
  0x5c   :  { %505 = vmatpush.msra.mxu2 %v88_v51  ;;  %524 = vmatpush.msra.mxu3 %v122_v52  ;;  %v166_v34 = vld [vmem:[%s1468_s1 + $0x4b8] sm:$0xff]  ;;  %v228_v36 = vld [vmem:[%s1468_s1 + $0x6a8] sm:$0xff] }
  0x5d   :  { %465 = vmatpush.msra.mxu0 %v24_v53  ;;  %484 = vmatpush.msra.mxu1 %v58_v55  ;;  %v262_v37 = vld [vmem:[%s1468_s1 + $0x7b8] sm:$0xff]  ;;  %v164_v38 = vld [vmem:[%s1468_s1 + $0x4a8] sm:$0xff] }
  0x5e   :  { %506 = vmatpush.msra.mxu2 %v86_v56  ;;  %525 = vmatpush.msra.mxu3 %v120_v57  ;;  %v198_v39 = vld [vmem:[%s1468_s1 + $0x5b8] sm:$0xff]  ;;  %v260_v41 = vld [vmem:[%s1468_s1 + $0x7a8] sm:$0xff] }
  0x5f   :  { %466 = vmatpush.msra.mxu0 %v22_v58  ;;  %485 = vmatpush.msra.mxu1 %v56_v59  ;;  %v226_v40 = vld [vmem:[%s1468_s1 + $0x698] sm:$0xff]  ;;  %v196_v43 = vld [vmem:[%s1468_s1 + $0x5a8] sm:$0xff] }
  0x60   :  { %507 = vmatpush.msra.mxu2 %v84_v60  ;;  %526 = vmatpush.msra.mxu3 %v118_v62  ;;  %v162_v42 = vld [vmem:[%s1468_s1 + $0x498] sm:$0xff]  ;;  %v224_v44 = vld [vmem:[%s1468_s1 + $0x688] sm:$0xff] }
  0x61   :  { %467 = vmatpush.msra.mxu0 %v20_v63  ;;  %486 = vmatpush.msra.mxu1 %v54_v0  ;;  %v258_v45 = vld [vmem:[%s1468_s1 + $0x798] sm:$0xff]  ;;  %v160_v46 = vld [vmem:[%s1468_s1 + $0x488] sm:$0xff] }
  0x62   :  { %508 = vmatpush.msra.mxu2 %v82_v2  ;;  %527 = vmatpush.msra.mxu3 %v116_v4  ;;  %v194_v47 = vld [vmem:[%s1468_s1 + $0x598] sm:$0xff]  ;;  %v256_v49 = vld [vmem:[%s1468_s1 + $0x788] sm:$0xff] }
  0x63   :  { %468 = vmatpush.msra.mxu0 %v18_v5  ;;  %487 = vmatpush.msra.mxu1 %v52_v6  ;;  %v222_v48 = vld [vmem:[%s1468_s1 + $0x678] sm:$0xff]  ;;  %v192_v51 = vld [vmem:[%s1468_s1 + $0x588] sm:$0xff] }
  0x64   :  { %509 = vmatpush.msra.mxu2 %v80_v7  ;;  %528 = vmatpush.msra.mxu3 %v114_v9  ;;  %v158_v50 = vld [vmem:[%s1468_s1 + $0x478] sm:$0xff]  ;;  %v220_v52 = vld [vmem:[%s1468_s1 + $0x668] sm:$0xff] }
  0x65   :  { %469 = vmatpush.msra.mxu0 %v16_v11  ;;  %488 = vmatpush.msra.mxu1 %v50_v12  ;;  %v254_v53 = vld [vmem:[%s1468_s1 + $0x778] sm:$0xff]  ;;  %v156_v55 = vld [vmem:[%s1468_s1 + $0x468] sm:$0xff] }
  0x66   :  { %574 = vmatpush.msrb.mxu2 %v238_v10  ;;  %529 = vmatpush.msra.mxu3 %v112_v13  ;;  %v190_v56 = vld [vmem:[%s1468_s1 + $0x578] sm:$0xff]  ;;  %v252_v58 = vld [vmem:[%s1468_s1 + $0x768] sm:$0xff] }
  0x67   :  { %534 = vmatpush.msrb.mxu0 %v174_v14  ;;  %489 = vmatpush.msra.mxu1 %v48_v18  ;;  %v218_v57 = vld [vmem:[%s1468_s1 + $0x658] sm:$0xff]  ;;  %v188_v60 = vld [vmem:[%s1468_s1 + $0x568] sm:$0xff] }
  0x68   :  { %575 = vmatpush.msrb.mxu2 %v236_v15  ;;  %594 = vmatpush.msrb.mxu3 %v270_v16  ;;  %v154_v59 = vld [vmem:[%s1468_s1 + $0x458] sm:$0xff]  ;;  %v216_v62 = vld [vmem:[%s1468_s1 + $0x648] sm:$0xff] }
  0x69   :  { %535 = vmatpush.msrb.mxu0 %v172_v19  ;;  %554 = vmatpush.msrb.mxu1 %v206_v20  ;;  %v250_v63 = vld [vmem:[%s1468_s1 + $0x758] sm:$0xff]  ;;  %v152_v0 = vld [vmem:[%s1468_s1 + $0x448] sm:$0xff] }
  0x6a   :  { %576 = vmatpush.msrb.mxu2 %v234_v22  ;;  %595 = vmatpush.msrb.mxu3 %v268_v24  ;;  %v186_v2 = vld [vmem:[%s1468_s1 + $0x558] sm:$0xff]  ;;  %v248_v5 = vld [vmem:[%s1468_s1 + $0x748] sm:$0xff] }
  0x6b   :  { %536 = vmatpush.msrb.mxu0 %v170_v25  ;;  %555 = vmatpush.msrb.mxu1 %v204_v26  ;;  %v214_v4 = vld [vmem:[%s1468_s1 + $0x638] sm:$0xff]  ;;  %v184_v7 = vld [vmem:[%s1468_s1 + $0x548] sm:$0xff] }
  0x6c   :  { %577 = vmatpush.msrb.mxu2 %v232_v28  ;;  %596 = vmatpush.msrb.mxu3 %v266_v29  ;;  %v150_v6 = vld [vmem:[%s1468_s1 + $0x438] sm:$0xff]  ;;  %v212_v9 = vld [vmem:[%s1468_s1 + $0x628] sm:$0xff] }
  0x6d   :  { %537 = vmatpush.msrb.mxu0 %v168_v30  ;;  %556 = vmatpush.msrb.mxu1 %v202_v31  ;;  %v148_v10 = vld [vmem:[%s1468_s1 + $0x428] sm:$0xff]  ;;  %v182_v11 = vld [vmem:[%s1468_s1 + $0x538] sm:$0xff] }
  0x6e   :  { %578 = vmatpush.msrb.mxu2 %v230_v32  ;;  %597 = vmatpush.msrb.mxu3 %v264_v33  ;;  %v244_v12 = vld [vmem:[%s1468_s1 + $0x728] sm:$0xff]  ;;  %v242_v15 = vld [vmem:[%s1468_s1 + $0x718] sm:$0xff] }
  0x6f   :  { %538 = vmatpush.msrb.mxu0 %v166_v34  ;;  %557 = vmatpush.msrb.mxu1 %v200_v35  ;;  %v180_v13 = vld [vmem:[%s1468_s1 + $0x528] sm:$0xff]  ;;  %v178_v16 = vld [vmem:[%s1468_s1 + $0x518] sm:$0xff] }
  0x70   :  { %579 = vmatpush.msrb.mxu2 %v228_v36  ;;  %598 = vmatpush.msrb.mxu3 %v262_v37  ;;  %v208_v14 = vld [vmem:[%s1468_s1 + $0x608] sm:$0xff] }
  0x71   :  { %539 = vmatpush.msrb.mxu0 %v164_v38  ;;  %558 = vmatpush.msrb.mxu1 %v198_v39  ;;  %v240_v18 = vld [vmem:[%s1468_s1 + $0x708] sm:$0xff] }
  0x72   :  { %580 = vmatpush.msrb.mxu2 %v226_v40  ;;  %599 = vmatpush.msrb.mxu3 %v260_v41  ;;  %v176_v19 = vld [vmem:[%s1468_s1 + $0x508] sm:$0xff] }
  0x73   :  { %540 = vmatpush.msrb.mxu0 %v162_v42  ;;  %559 = vmatpush.msrb.mxu1 %v196_v43 }
  0x74   :  { %581 = vmatpush.msrb.mxu2 %v224_v44  ;;  %600 = vmatpush.msrb.mxu3 %v258_v45 }
  0x75   :  { %541 = vmatpush.msrb.mxu0 %v160_v46  ;;  %560 = vmatpush.msrb.mxu1 %v194_v47 }
  0x76   :  { %582 = vmatpush.msrb.mxu2 %v222_v48  ;;  %601 = vmatpush.msrb.mxu3 %v256_v49 }
  0x77   :  { %542 = vmatpush.msrb.mxu0 %v158_v50  ;;  %561 = vmatpush.msrb.mxu1 %v192_v51  ;;  %v620_v50 = vlaneseq }
  0x78   :  { %583 = vmatpush.msrb.mxu2 %v220_v52  ;;  %602 = vmatpush.msrb.mxu3 %v254_v53 }
  0x79   :  { %543 = vmatpush.msrb.mxu0 %v156_v55  ;;  %562 = vmatpush.msrb.mxu1 %v190_v56  ;;  %vm622_vm1 = vcmp.lt.s32.totalorder %v620_v50, 160 }
  0x7a   :  { %584 = vmatpush.msrb.mxu2 %v218_v57  ;;  %603 = vmatpush.msrb.mxu3 %v252_v58 }
  0x7b   :  { %544 = vmatpush.msrb.mxu0 %v154_v59  ;;  %563 = vmatpush.msrb.mxu1 %v188_v60 }
  0x7c   :  { %585 = vmatpush.msrb.mxu2 %v216_v62  ;;  %604 = vmatpush.msrb.mxu3 %v250_v63 }
  0x7d   :  { %510 = vmatmul.f32.vlgmr.msra.gmra.mxu2 %v275_v61  ;;  %545 = vmatpush.msrb.mxu0 %v152_v0  ;;  %v246_v61 = vld [vmem:[%s1468_s1 + $0x738] sm:$0xff] }
  0x7e   :  { %564 = vmatpush.msrb.mxu1 %v186_v2  ;;  %586 = vmatpush.msrb.mxu2 %v214_v4 }
  0x7f   :  { %605 = vmatpush.msrb.mxu3 %v248_v5  ;;  %470 = vmatmul.f32.vlgmr.msra.gmra.mxu0 %v273_v1  ;;  %v210_v1 = vld [vmem:[%s1468_s1 + $0x618] sm:$0xff] }
  0x80   :  { %530 = vmatmul.f32.vlgmr.msra.gmra.mxu3 %v276_v3  ;;  %546 = vmatpush.msrb.mxu0 %v150_v6  ;;  %v146_v3 = vld [vmem:[%s1468_s1 + $0x418] sm:$0xff] }
  0x81   :  { %565 = vmatpush.msrb.mxu1 %v184_v7  ;;  %587 = vmatpush.msrb.mxu2 %v212_v9 }
  0x82   :  { %606 = vmatpush.msrb.mxu3 %v246_v61  ;;  %490 = vmatmul.f32.vlgmr.msra.gmra.mxu1 %v274_v8  ;;  %v144_v8 = vld [vmem:[%s1468_s1 + $0x408] sm:$0xff] }
  0x83   :  { %547 = vmatpush.msrb.mxu0 %v148_v10  ;;  %566 = vmatpush.msrb.mxu1 %v182_v11 }
  0x84   :  { %588 = vmatpush.msrb.mxu2 %v210_v1  ;;  %607 = vmatpush.msrb.mxu3 %v244_v12 }
  0x85   :  { %548 = vmatpush.msrb.mxu0 %v146_v3  ;;  %567 = vmatpush.msrb.mxu1 %v180_v13 }
  0x86   :  { %589 = vmatpush.msrb.mxu2 %v208_v14  ;;  %608 = vmatpush.msrb.mxu3 %v242_v15 }
  0x87   :  { %590 = vmatmul.f32.vlgmr.msrb.gmra.mxu2 %v279_v17  ;;  %549 = vmatpush.msrb.mxu0 %v144_v8  ;;  %v271_v17 = vld [vmem:[%s1470_s2] sm:$0x3] }
  0x88   :  { %568 = vmatpush.msrb.mxu1 %v178_v16  ;;  %609 = vmatpush.msrb.mxu3 %v240_v18  ;;  %v290_v25 = vperm.slane %v271_v17, 0  ;;  %v291_v32 = vperm.slane %v271_v17, 1 }
  0x89   :  { %550 = vmatmul.f32.vlgmr.msrb.gmra.mxu0 %v277_v21  ;;  %610 = vmatmul.f32.vlgmr.msrb.gmra.mxu3 %v280_v23 }
  0x8a   :  { %569 = vmatpush.msrb.mxu1 %v176_v19 }
  0x8b   :  { %570 = vmatmul.f32.vlgmr.msrb.gmra.mxu1 %v278_v27 }
  0xc0   :  { %v311_v20 = vpop.f32.mrf.mxu0 }
  0xc1   :  { %v312_v28 = vadd.f32 %v311_v20, %v290_v25 }
  0xc4   :  { %v331_v22 = vpop.f32.mrf.mxu1  ;;  %v351_v24 = vpop.f32.mrf.mxu2 }
  0xc5   :  { %v332_v30 = vadd.f32 %v331_v22, %v312_v28 }
  0xc7   :  { %v371_v26 = vpop.f32.mrf.mxu3  ;;  %v352_v23 = vadd.f32 %v351_v24, %v332_v30 }
  0xc9   :  { %v372_v27 = vadd.f32 %v371_v26, %v352_v23 }
  0xca   :  { %v391_v29 = vpop.f32.mrf.mxu0 }
  0xcb   :  { %v392_v39 = vadd.f32 %v391_v29, %v372_v27 }
  0xcd   :  { %v411_v21 = vpop.f32.mrf.mxu1 }
  0xce   :  { %v431_v31 = vpop.f32.mrf.mxu2  ;;  %v412_v43 = vadd.f32 %v411_v21, %v392_v39 }
  0xd0   :  { %v432_v48 = vadd.f32 %v431_v31, %v412_v43 }
  0xd1   :  { %v451_v33 = vpop.f32.mrf.mxu3 }
  0xd2   :  { %v452_v53 = vadd.f32 %v451_v33, %v432_v48 }
  0xfc   :  { %v471_v34 = vpop.f32.mrf.mxu0 }
  0xfd   :  { %v472_v54 = vadd.f32 %v471_v34, %v291_v32 }
  0xff   :  { %v491_v35 = vpop.f32.mrf.mxu1 }
 0x100   :  { %v492_v36 = vadd.f32 %v491_v35, %v472_v54  ;;  %v511_v37 = vpop.f32.mrf.mxu2 }
 0x102   :  { %v512_v38 = vadd.f32 %v511_v37, %v492_v36 }
 0x103   :  { %v531_v40 = vpop.f32.mrf.mxu3 }
 0x104   :  { %v532_v41 = vadd.f32 %v531_v40, %v512_v38 }
 0x106   :  { %v551_v42 = vpop.f32.mrf.mxu0 }
 0x107   :  { %v552_v44 = vadd.f32 %v551_v42, %v532_v41 }
 0x108   :  { %v571_v45 = vpop.f32.mrf.mxu1 }
 0x109   :  { %v572_v46 = vadd.f32 %v571_v45, %v552_v44 }
 0x10a   :  { %v591_v47 = vpop.f32.mrf.mxu2 }
 0x10b   :  { %v592_v49 = vadd.f32 %v591_v47, %v572_v46 }
 0x10c   :  { %v611_v51 = vpop.f32.mrf.mxu3 }
 0x10d   :  { %v612_v52 = vadd.f32 %v611_v51, %v592_v49 }
 0x10f   :  { %v616_v55 = vrot.slane %v612_v52, 7 }
 0x111   :  { %v618_v56 = vsel %vm617_vm0, %v452_v53, %v616_v55 }
 0x112   :  { %624 = vst.msk [vmem:[%s1471_s3] sm:$0x3] %vm622_vm1, %v618_v56 }

</bundles_post_ra>
